<compile_context>
chip_gen: v7x
topology: tpu7x:2x2x1
jax: 0.10.0
libtpu: 0.0.40
codegen_flags: <defaults>
</compile_context>

<pallas_src>
import functools

import jax
import jax.numpy as jnp
from jax.experimental import pallas as pl
from jax.experimental.pallas import tpu as pltpu

LN_EPS = 1e-5  # torch.nn.LayerNorm default


def _round_up(x, m):
    return ((x + m - 1) // m) * m


def _merged_ln_linear_kernel(x_ref, wa_ref, wb_ref, bias_ref, o_ref, *,
                             whp, inv_d4):
    """Fused 2x2-merge + LayerNorm(4*dim) + Linear(4*dim -> 2*dim) on a row tile.

    x_ref:    (TI, 2*WHp, 2*dim)  corner-rows r=0 in [:, :WHp, :], r=1 in [:, WHp:, :]
    wa_ref:   (2*dim, D2p) bf16   gamma-folded weight rows for features [0:2*dim]
    wb_ref:   (2*dim, D2p) bf16   gamma-folded weight rows for features [2*dim:4*dim]
    bias_ref: (1, D2p)     f32    beta @ W
    o_ref:    (TI*WHp, D2p)
    """
    ti = x_ref.shape[0]
    d2in = x_ref.shape[-1]
    tm = ti * whp

    # Two halves of the (virtual) concatenated 4*dim feature vector.
    # WHp is a multiple of 8, so these collapses are layout-free.
    xa = x_ref[:, 0:whp, :].reshape(tm, d2in).astype(jnp.float32)
    xb = x_ref[:, whp:, :].reshape(tm, d2in).astype(jnp.float32)

    # LayerNorm statistics over the concatenated 4*dim features.
    mean = (jnp.sum(xa, axis=-1, keepdims=True)
            + jnp.sum(xb, axis=-1, keepdims=True)) * inv_d4
    xac = xa - mean
    xbc = xb - mean
    var = (jnp.sum(xac * xac, axis=-1, keepdims=True)
           + jnp.sum(xbc * xbc, axis=-1, keepdims=True)) * inv_d4
    inv = jax.lax.rsqrt(var + LN_EPS)

    # gamma already folded into wa/wb; beta folded into bias.
    an = (xac * inv).astype(jnp.bfloat16)
    bn = (xbc * inv).astype(jnp.bfloat16)

    acc = jnp.dot(an, wa_ref[...], preferred_element_type=jnp.float32)
    acc = acc + jnp.dot(bn, wb_ref[...], preferred_element_type=jnp.float32)
    acc = acc + bias_ref[...]
    o_ref[...] = acc.astype(o_ref.dtype)


def _merged_ln_linear(x3, wa, wb, bias, *, ti, whp, d2p, out_dtype=jnp.float32):
    """x3: (BLp, 2*WHp, 2*dim); returns (BLp*WHp, D2p)."""
    blp = x3.shape[0]
    d2in = x3.shape[-1]
    tm = ti * whp
    grid = (blp // ti,)

    kernel = functools.partial(_merged_ln_linear_kernel, whp=whp,
                               inv_d4=1.0 / (2.0 * d2in))
    return pl.pallas_call(
        kernel,
        out_shape=jax.ShapeDtypeStruct((blp * whp, d2p), out_dtype),
        grid_spec=pltpu.PrefetchScalarGridSpec(
            num_scalar_prefetch=0,
            grid=grid,
            in_specs=[
                pl.BlockSpec((ti, 2 * whp, d2in), lambda i: (i, 0, 0)),
                pl.BlockSpec((d2in, d2p), lambda i: (0, 0)),
                pl.BlockSpec((d2in, d2p), lambda i: (0, 0)),
                pl.BlockSpec((1, d2p), lambda i: (0, 0)),
            ],
            out_specs=pl.BlockSpec((tm, d2p), lambda i: (i, 0)),
        ),
        compiler_params=pltpu.CompilerParams(
            dimension_semantics=("parallel",),
            vmem_limit_bytes=32 * 1024 * 1024,
        ),
    )(x3, wa, wb, bias)


def downsample2d_forward(x, n_patch_lat, n_patch_lon, params,
                         downsampling=(2, 2), tile_rows=512):
    """Mirror of DownSample2D.forward.

    x: (B, n_patch_lon * n_patch_lat, dim) float32
    params: dict with 'gamma','beta' (4*dim,), 'w' (4*dim, 2*dim)  [w = W_torch.T]
    """
    B = x.shape[0]
    dim = x.shape[-1]

    # reshape(x, (B, n_patch_lon, n_patch_lat, dim)) -- exactly as PyTorch code.
    x = x.reshape(B, n_patch_lon, n_patch_lat, dim)

    # Module padding to multiples of `downsampling`, exactly as PyTorch.
    dy, dz = downsampling
    y_tot = (dy - x.shape[1] % dy) % dy
    z_tot = (dz - x.shape[2] % dz) % dz
    y1, y2 = y_tot // 2, y_tot - y_tot // 2
    z1, z2 = z_tot // 2, z_tot - z_tot // 2

    L = x.shape[1] + y_tot            # module-padded spatial extents
    W = x.shape[2] + z_tot
    LH, WH = L // 2, W // 2           # merged-patch grid (2x2, as hard-coded in PyTorch)

    # Extra zero-padding so the in-kernel flatten is sublane-aligned (layout-free).
    sub = {4: 8, 2: 16, 1: 32}.get(jnp.dtype(x.dtype).itemsize, 8)
    WHp = _round_up(WH, sub)
    z2_extra = 2 * (WHp - WH)

    # One fused pad; a no-op when everything is already aligned.
    x = jnp.pad(x, ((0, 0), (y1, y2), (z1, z2 + z2_extra), (0, 0)))

    d2in = 2 * dim
    d2 = params["w"].shape[1]         # = 2 * dim
    d2p = _round_up(d2, 128)          # lane-dense output width

    # Free reshape: rows = (b, lh); dim1 index = r*WHp + j (2x2 row / merged col);
    # dim2 index = c*dim + d (2x2 col / channel) == features of one half.
    BL = B * LH
    x3 = x.reshape(BL, 2 * WHp, d2in)

    # Row-tile size: ~tile_rows merged tokens per grid step, capped so the
    # double-buffered working set stays well under the 32 MiB scoped-VMEM limit.
    bytes_per_ti = WHp * (2 * d2in + d2p) * 4
    ti = max(1, tile_rows // WHp)
    ti = min(ti, max(1, (10 * 1024 * 1024) // max(1, bytes_per_ti)), BL)
    BLp = _round_up(BL, ti)
    if BLp != BL:
        x3 = jnp.pad(x3, ((0, BLp - BL), (0, 0), (0, 0)))

    # Fold gamma into the weight and beta into a bias; zero-pad output columns.
    wg = params["gamma"][:, None] * params["w"]          # (4*dim, 2*dim)
    bias = params["beta"] @ params["w"]                  # (2*dim,)
    if d2p != d2:
        wg = jnp.pad(wg, ((0, 0), (0, d2p - d2)))
        bias = jnp.pad(bias, (0, d2p - d2))
    wa = wg[:d2in].astype(jnp.bfloat16)                  # features [0:2*dim]
    wb = wg[d2in:].astype(jnp.bfloat16)                  # features [2*dim:4*dim]
    bias = bias.reshape(1, d2p).astype(jnp.float32)

    out2d = _merged_ln_linear(x3, wa, wb, bias, ti=ti, whp=WHp, d2p=d2p)

    # Drop alignment padding (rows beyond BL, tokens beyond WH, cols beyond d2).
    out = out2d.reshape(BLp, WHp, d2p)[:BL, :WH, :d2]
    return out.reshape(B, LH * WH, d2)


def init_params(dim, key):
    """Deterministic synthetic parameters matching the module's shapes."""
    k1, k2, k3 = jax.random.split(key, 3)
    d4, d2 = 4 * dim, 2 * dim
    # Linear(4*dim, 2*dim, bias=False): torch weight is [2*dim, 4*dim];
    # we store the transpose [4*dim, 2*dim] for row-vector @ weight.
    w_t = jax.random.normal(k1, (d2, d4), jnp.float32) * 0.02
    gamma = 1.0 + 0.01 * jax.random.normal(k2, (d4,), jnp.float32)
    beta = 0.01 * jax.random.normal(k3, (d4,), jnp.float32)
    return {"w": w_t.T, "gamma": gamma, "beta": beta}


def _reference(x, n_patch_lat, n_patch_lon, params, downsampling=(2, 2)):
    """Pure-JAX f32 mirror of the PyTorch forward (for testing)."""
    B, _, dim = x.shape
    x = x.reshape(B, n_patch_lon, n_patch_lat, dim)
    dy, dz = downsampling
    y_tot = (dy - x.shape[1] % dy) % dy
    z_tot = (dz - x.shape[2] % dz) % dz
    y1, y2 = y_tot // 2, y_tot - y_tot // 2
    z1, z2 = z_tot // 2, z_tot - z_tot // 2
    x = jnp.pad(x, ((0, 0), (y1, y2), (z1, z2), (0, 0)))
    L, W = x.shape[1], x.shape[2]
    x = x.reshape(B, L // 2, 2, W // 2, 2, dim)
    x = jnp.transpose(x, (0, 1, 3, 2, 4, 5)).reshape(B, (L // 2) * (W // 2), 4 * dim)
    mu = jnp.mean(x, -1, keepdims=True)
    var = jnp.mean((x - mu) ** 2, -1, keepdims=True)
    xn = (x - mu) * jax.lax.rsqrt(var + LN_EPS) * params["gamma"] + params["beta"]
    return xn @ params["w"]


if __name__ == "__main__":
    key = jax.random.PRNGKey(0)
    k1, k2, k3, k4 = jax.random.split(key, 4)

    # --- Test 1: aligned shapes; small tile_rows forces a multi-step grid.
    B, dim, n_lat, n_lon = 2, 32, 16, 16
    x = jax.random.normal(k1, (B, n_lon * n_lat, dim), jnp.float32)
    params = init_params(dim, k2)
    fwd = jax.jit(functools.partial(
        downsample2d_forward, n_patch_lat=n_lat, n_patch_lon=n_lon,
        params=params, tile_rows=128))
    out = fwd(x)
    jax.block_until_ready(out)
    ref = _reference(x, n_lat, n_lon, params)
    assert out.shape == (B, (n_lon // 2) * (n_lat // 2), 2 * dim), out.shape
    err = float(jnp.max(jnp.abs(out - ref)))
    assert jnp.allclose(out, ref, atol=1e-2, rtol=1e-2), err

    # --- Test 2: odd spatial extents -> module padding + alignment padding paths.
    B2, dim2, n_lat2, n_lon2 = 1, 48, 9, 5
    x2 = jax.random.normal(k3, (B2, n_lon2 * n_lat2, dim2), jnp.float32)
    params2 = init_params(dim2, k4)
    fwd2 = jax.jit(functools.partial(
        downsample2d_forward, n_patch_lat=n_lat2, n_patch_lon=n_lon2,
        params=params2))
    out2 = fwd2(x2)
    jax.block_until_ready(out2)
    ref2 = _reference(x2, n_lat2, n_lon2, params2)
    assert out2.shape == ref2.shape, (out2.shape, ref2.shape)
    err2 = float(jnp.max(jnp.abs(out2 - ref2)))
    assert jnp.allclose(out2, ref2, atol=1e-2, rtol=1e-2), err2

    print("KERNEL_OK")
</pallas_src>

<mosaic_0001>
module attributes {stable_mosaic.version = 11 : i64} {
  func.func @_merged_ln_linear_kernel(%arg0: i32, %arg1: memref<16x16x64xf32, #tpu.memory_space<vmem>>, %arg2: memref<64x128xbf16, #tpu.memory_space<vmem>>, %arg3: memref<64x128xbf16, #tpu.memory_space<vmem>>, %arg4: memref<1x128xf32, #tpu.memory_space<vmem>>, %arg5: memref<128x128xf32, #tpu.memory_space<vmem>>) attributes {dimension_semantics = [#tpu.dimension_semantics<parallel>], iteration_bounds = array<i64: 1>, scalar_prefetch = 0 : i64, scratch_operands = 0 : i64, tpu.core_type = #tpu.core_type<tc>, window_params = [{transform_indices = @transform_0, window_bounds = array<i64: 16, 16, 64>}, {pipeline_mode = #tpu.pipeline_mode<synchronous>, transform_indices = @transform_1, window_bounds = array<i64: 64, 128>}, {pipeline_mode = #tpu.pipeline_mode<synchronous>, transform_indices = @transform_2, window_bounds = array<i64: 64, 128>}, {pipeline_mode = #tpu.pipeline_mode<synchronous>, transform_indices = @transform_3, window_bounds = array<i64: 1, 128>}, {transform_indices = @transform_4, window_bounds = array<i64: 128, 128>}]} {
    %c0 = arith.constant 0 : index
    %c0_0 = arith.constant 0 : index
    %c0_1 = arith.constant 0 : index
    %0 = vector.load %arg1[%c0, %c0_0, %c0_1] : memref<16x16x64xf32, #tpu.memory_space<vmem>>, vector<16x8x64xf32>
    %1 = vector.shape_cast %0 : vector<16x8x64xf32> to vector<128x64xf32>
    %c0_2 = arith.constant 0 : index
    %c8 = arith.constant 8 : index
    %c0_3 = arith.constant 0 : index
    %2 = vector.load %arg1[%c0_2, %c8, %c0_3] : memref<16x16x64xf32, #tpu.memory_space<vmem>>, vector<16x8x64xf32>
    %3 = vector.shape_cast %2 : vector<16x8x64xf32> to vector<128x64xf32>
    %cst = arith.constant dense<0.000000e+00> : vector<128xf32>
    %4 = vector.multi_reduction <add>, %1, %cst [1] : vector<128x64xf32> to vector<128xf32>
    %5 = vector.shape_cast %4 : vector<128xf32> to vector<128x1xf32>
    %cst_4 = arith.constant dense<0.000000e+00> : vector<128xf32>
    %6 = vector.multi_reduction <add>, %3, %cst_4 [1] : vector<128x64xf32> to vector<128xf32>
    %7 = vector.shape_cast %6 : vector<128xf32> to vector<128x1xf32>
    %8 = arith.addf %5, %7 : vector<128x1xf32>
    %cst_5 = arith.constant 7.812500e-03 : f32
    %9 = vector.broadcast %cst_5 : f32 to vector<128x1xf32>
    %10 = arith.mulf %8, %9 : vector<128x1xf32>
    %11 = vector.broadcast %10 : vector<128x1xf32> to vector<128x64xf32>
    %12 = arith.subf %1, %11 : vector<128x64xf32>
    %13 = vector.broadcast %10 : vector<128x1xf32> to vector<128x64xf32>
    %14 = arith.subf %3, %13 : vector<128x64xf32>
    %15 = arith.mulf %12, %12 : vector<128x64xf32>
    %cst_6 = arith.constant dense<0.000000e+00> : vector<128xf32>
    %16 = vector.multi_reduction <add>, %15, %cst_6 [1] : vector<128x64xf32> to vector<128xf32>
    %17 = vector.shape_cast %16 : vector<128xf32> to vector<128x1xf32>
    %18 = arith.mulf %14, %14 : vector<128x64xf32>
    %cst_7 = arith.constant dense<0.000000e+00> : vector<128xf32>
    %19 = vector.multi_reduction <add>, %18, %cst_7 [1] : vector<128x64xf32> to vector<128xf32>
    %20 = vector.shape_cast %19 : vector<128xf32> to vector<128x1xf32>
    %21 = arith.addf %17, %20 : vector<128x1xf32>
    %cst_8 = arith.constant 7.812500e-03 : f32
    %22 = vector.broadcast %cst_8 : f32 to vector<128x1xf32>
    %23 = arith.mulf %21, %22 : vector<128x1xf32>
    %cst_9 = arith.constant 9.99999974E-6 : f32
    %24 = vector.broadcast %cst_9 : f32 to vector<128x1xf32>
    %25 = arith.addf %23, %24 : vector<128x1xf32>
    %26 = math.rsqrt %25 : vector<128x1xf32>
    %27 = vector.broadcast %26 : vector<128x1xf32> to vector<128x64xf32>
    %28 = arith.mulf %12, %27 : vector<128x64xf32>
    %29 = arith.truncf %28 : vector<128x64xf32> to vector<128x64xbf16>
    %30 = vector.broadcast %26 : vector<128x1xf32> to vector<128x64xf32>
    %31 = arith.mulf %14, %30 : vector<128x64xf32>
    %32 = arith.truncf %31 : vector<128x64xf32> to vector<128x64xbf16>
    %c0_10 = arith.constant 0 : index
    %c0_11 = arith.constant 0 : index
    %33 = vector.load %arg2[%c0_10, %c0_11] : memref<64x128xbf16, #tpu.memory_space<vmem>>, vector<64x128xbf16>
    %cst_12 = arith.constant dense<0.000000e+00> : vector<128x128xf32>
    %34 = tpu.matmul %29, %33, %cst_12 {dimension_numbers = #tpu.dot_dimension_numbers<[1], [0], [0], [1], [0, 0, 1, 1], [], []>} : vector<128x64xbf16>, vector<64x128xbf16>, vector<128x128xf32> -> vector<128x128xf32>
    %c0_13 = arith.constant 0 : index
    %c0_14 = arith.constant 0 : index
    %35 = vector.load %arg3[%c0_13, %c0_14] : memref<64x128xbf16, #tpu.memory_space<vmem>>, vector<64x128xbf16>
    %cst_15 = arith.constant dense<0.000000e+00> : vector<128x128xf32>
    %36 = tpu.matmul %32, %35, %cst_15 {dimension_numbers = #tpu.dot_dimension_numbers<[1], [0], [0], [1], [0, 0, 1, 1], [], []>} : vector<128x64xbf16>, vector<64x128xbf16>, vector<128x128xf32> -> vector<128x128xf32>
    %37 = arith.addf %34, %36 : vector<128x128xf32>
    %c0_16 = arith.constant 0 : index
    %c0_17 = arith.constant 0 : index
    %38 = vector.load %arg4[%c0_16, %c0_17] : memref<1x128xf32, #tpu.memory_space<vmem>>, vector<1x128xf32>
    %39 = vector.broadcast %38 : vector<1x128xf32> to vector<128x128xf32>
    %40 = arith.addf %37, %39 : vector<128x128xf32>
    %c0_18 = arith.constant 0 : index
    %c0_19 = arith.constant 0 : index
    %41 = vector.load %arg5[%c0_18, %c0_19] : memref<128x128xf32, #tpu.memory_space<vmem>>, vector<128x128xf32>
    tpu.vector_store %arg5[%c0_18, %c0_19], %40 {strides = array<i32>} : memref<128x128xf32, #tpu.memory_space<vmem>>, vector<128x128xf32>,
    return
  }
  func.func @transform_0(%arg0: i32) -> (i32, i32, i32) {
    %c0_i32 = arith.constant 0 : i32
    %c0_i32_0 = arith.constant 0 : i32
    %c0_i32_1 = arith.constant 0 : i32
    return %arg0, %c0_i32, %c0_i32_0 : i32, i32, i32
  }
  func.func @transform_1(%arg0: i32) -> (i32, i32) {
    %c0_i32 = arith.constant 0 : i32
    %c0_i32_0 = arith.constant 0 : i32
    %c0_i32_1 = arith.constant 0 : i32
    return %c0_i32, %c0_i32_0 : i32, i32
  }
  func.func @transform_2(%arg0: i32) -> (i32, i32) {
    %c0_i32 = arith.constant 0 : i32
    %c0_i32_0 = arith.constant 0 : i32
    %c0_i32_1 = arith.constant 0 : i32
    return %c0_i32, %c0_i32_0 : i32, i32
  }
  func.func @transform_3(%arg0: i32) -> (i32, i32) {
    %c0_i32 = arith.constant 0 : i32
    %c0_i32_0 = arith.constant 0 : i32
    %c0_i32_1 = arith.constant 0 : i32
    return %c0_i32, %c0_i32_0 : i32, i32
  }
  func.func @transform_4(%arg0: i32) -> (i32, i32) {
    %c0_i32 = arith.constant 0 : i32
    %c0_i32_0 = arith.constant 0 : i32
    return %arg0, %c0_i32 : i32, i32
  }
}

</mosaic_0001>

<bundles_post_ra>
// kernel: downsample2d_forward.1
= control target key start
LH: loop header
LB: loop body
LE: loop exit
PB: predicated region body
PF: predicated region fallthrough
CT: control target
= control target key end

     0   :  { %vm51_vm0 = vcmask 523264   ;;  %s1542_s0 = inlined_call_operand.vmem [shape: f32[16,16,64], index: 0, kind: input, shape index: {}]   ;;  %s1543_s1 = inlined_call_operand.vmem [shape: bf16[64,128], index: 1, kind: input, shape index: {}]   ;;  %s1544_s2 = inlined_call_operand.vmem [shape: bf16[64,128], index: 2, kind: input, shape index: {}]   ;;  %s1545_s3 = inlined_call_operand.vmem [shape: f32[1,128], index: 3, kind: input, shape index: {}]   ;;  %s1546_s4 = inlined_call_operand.hbm [shape: f32[128,128], index: 4, kind: output, shape index: {}]  }
   0x1   :  { %v1024_v0 = vld [vmem:[%s1542_s0 + $0x8] sm:$0xff]  ;;  %v1029_v1 = vld [vmem:[%s1542_s0] sm:$0xff]  ;;  %v1034_v2 = vld [vmem:[%s1542_s0 + $0x18] sm:$0xff] }
   0x2   :  { %v100_v3 = vsel %vm51_vm0, %v1024_v0, 0.0  ;;  %v52_v4 = vsel %vm51_vm0, %v1029_v1, 0.0  ;;  %v1043_v5 = vld [vmem:[%s1542_s0 + $0x10] sm:$0xff]  ;;  %v103_v6 = vsel %vm51_vm0, %v1034_v2, 0.0  ;;  %v1057_v9 = vld [vmem:[%s1542_s0 + $0x20] sm:$0xff]  ;;  %v1066_v12 = vld [vmem:[%s1542_s0 + $0x38] sm:$0xff] }
   0x3   :  { %101 = vadd.xlane.f32.xlu1 %v100_v3  ;;  %53 = vadd.xlane.f32.xlu0 %v52_v4  ;;  %v55_v7 = vsel %vm51_vm0, %v1043_v5, 0.0  ;;  %v1052_v8 = vld [vmem:[%s1542_s0 + $0x30] sm:$0xff]  ;;  %v58_v11 = vsel %vm51_vm0, %v1057_v9, 0.0  ;;  %v1071_v13 = vld [vmem:[%s1542_s0 + $0x28] sm:$0xff]  ;;  %v1081_v15 = vld [vmem:[%s1542_s0 + $0x40] sm:$0xff]  ;;  %v109_v16 = vsel %vm51_vm0, %v1066_v12, 0.0 }
   0x4   :  { %v61_v10 = vsel %vm51_vm0, %v1052_v8, 0.0  ;;  %v1076_v14 = vld [vmem:[%s1542_s0 + $0x50] sm:$0xff]  ;;  %v106_v17 = vsel %vm51_vm0, %v1071_v13, 0.0  ;;  %v64_v19 = vsel %vm51_vm0, %v1081_v15, 0.0  ;;  %v1094_v20 = vld [vmem:[%s1542_s0 + $0x58] sm:$0xff]  ;;  %v1099_v21 = vld [vmem:[%s1542_s0 + $0x48] sm:$0xff] }
   0x5   :  { %v67_v18 = vsel %vm51_vm0, %v1076_v14, 0.0 }
   0x7   :  { %104 = vadd.xlane.f32.xlu1 %v103_v6  ;;  %56 = vadd.xlane.f32.xlu0 %v55_v7 }
   0xb   :  { %62 = vadd.xlane.f32.xlu1 %v61_v10  ;;  %59 = vadd.xlane.f32.xlu0 %v58_v11 }
   0xf   :  { %110 = vadd.xlane.f32.xlu1 %v109_v16  ;;  %107 = vadd.xlane.f32.xlu0 %v106_v17 }
  0x10   :  { %9 = vsyncpa [#allocation3], 0  ;;  %v115_v22 = vsel %vm51_vm0, %v1094_v20, 0.0  ;;  %v112_v23 = vsel %vm51_vm0, %v1099_v21, 0.0  ;;  %v1108_v24 = vld [vmem:[%s1542_s0 + $0x70] sm:$0xff]  ;;  %v1113_v25 = vld [vmem:[%s1542_s0 + $0x60] sm:$0xff] }
  0x11   :  { %v73_v26 = vsel %vm51_vm0, %v1108_v24, 0.0  ;;  %v70_v27 = vsel %vm51_vm0, %v1113_v25, 0.0  ;;  %v1122_v28 = vld [vmem:[%s1542_s0 + $0x78] sm:$0xff]  ;;  %v1127_v29 = vld [vmem:[%s1542_s0 + $0x68] sm:$0xff]  ;;  %v1136_v32 = vld [vmem:[%s1542_s0 + $0x90] sm:$0xff] }
  0x12   :  { %v121_v30 = vsel %vm51_vm0, %v1122_v28, 0.0  ;;  %v118_v31 = vsel %vm51_vm0, %v1127_v29, 0.0  ;;  %v1141_v33 = vld [vmem:[%s1542_s0 + $0x80] sm:$0xff]  ;;  %v79_v34 = vsel %vm51_vm0, %v1136_v32, 0.0  ;;  %v1150_v36 = vld [vmem:[%s1542_s0 + $0x98] sm:$0xff]  ;;  %v1155_v37 = vld [vmem:[%s1542_s0 + $0x88] sm:$0xff] }
  0x13   :  { %68 = vadd.xlane.f32.xlu1 %v67_v18  ;;  %65 = vadd.xlane.f32.xlu0 %v64_v19  ;;  %v76_v35 = vsel %vm51_vm0, %v1141_v33, 0.0  ;;  %v127_v38 = vsel %vm51_vm0, %v1150_v36, 0.0  ;;  %v124_v39 = vsel %vm51_vm0, %v1155_v37, 0.0  ;;  %v1164_v40 = vld [vmem:[%s1542_s0 + $0xb0] sm:$0xff]  ;;  %v1169_v41 = vld [vmem:[%s1542_s0 + $0xa0] sm:$0xff]  ;;  %v1178_v44 = vld [vmem:[%s1542_s0 + $0xb8] sm:$0xff] }
  0x14   :  { %v85_v42 = vsel %vm51_vm0, %v1164_v40, 0.0  ;;  %v82_v43 = vsel %vm51_vm0, %v1169_v41, 0.0  ;;  %v1183_v45 = vld [vmem:[%s1542_s0 + $0xa8] sm:$0xff]  ;;  %v133_v46 = vsel %vm51_vm0, %v1178_v44, 0.0  ;;  %v1192_v48 = vld [vmem:[%s1542_s0 + $0xd0] sm:$0xff]  ;;  %v1197_v49 = vld [vmem:[%s1542_s0 + $0xc0] sm:$0xff] }
  0x15   :  { %v130_v47 = vsel %vm51_vm0, %v1183_v45, 0.0  ;;  %v91_v50 = vsel %vm51_vm0, %v1192_v48, 0.0  ;;  %v88_v51 = vsel %vm51_vm0, %v1197_v49, 0.0  ;;  %v1206_v52 = vld [vmem:[%s1542_s0 + $0xd8] sm:$0xff]  ;;  %v1211_v53 = vld [vmem:[%s1542_s0 + $0xc8] sm:$0xff]  ;;  %v1220_v56 = vld [vmem:[%s1542_s0 + $0xf0] sm:$0xff] }
  0x16   :  { %v139_v54 = vsel %vm51_vm0, %v1206_v52, 0.0  ;;  %v136_v55 = vsel %vm51_vm0, %v1211_v53, 0.0  ;;  %v1225_v57 = vld [vmem:[%s1542_s0 + $0xe0] sm:$0xff]  ;;  %v97_v58 = vsel %vm51_vm0, %v1220_v56, 0.0  ;;  %v1234_v60 = vld [vmem:[%s1542_s0 + $0xf8] sm:$0xff]  ;;  %v1239_v61 = vld [vmem:[%s1542_s0 + $0xe8] sm:$0xff] }
  0x17   :  { %116 = vadd.xlane.f32.xlu1 %v115_v22  ;;  %113 = vadd.xlane.f32.xlu0 %v112_v23  ;;  %v94_v59 = vsel %vm51_vm0, %v1225_v57, 0.0  ;;  %v145_v62 = vsel %vm51_vm0, %v1234_v60, 0.0  ;;  %v142_v63 = vsel %vm51_vm0, %v1239_v61, 0.0 }
  0x1b   :  { %74 = vadd.xlane.f32.xlu1 %v73_v26  ;;  %71 = vadd.xlane.f32.xlu0 %v70_v27 }
  0x1f   :  { %122 = vadd.xlane.f32.xlu1 %v121_v30  ;;  %119 = vadd.xlane.f32.xlu0 %v118_v31 }
  0x23   :  { %80 = vadd.xlane.f32.xlu1 %v79_v34  ;;  %77 = vadd.xlane.f32.xlu0 %v76_v35 }
  0x27   :  { %128 = vadd.xlane.f32.xlu1 %v127_v38  ;;  %125 = vadd.xlane.f32.xlu0 %v124_v39 }
  0x2b   :  { %86 = vadd.xlane.f32.xlu1 %v85_v42  ;;  %83 = vadd.xlane.f32.xlu0 %v82_v43 }
  0x2f   :  { %134 = vadd.xlane.f32.xlu1 %v133_v46  ;;  %131 = vadd.xlane.f32.xlu0 %v130_v47 }
  0x33   :  { %92 = vadd.xlane.f32.xlu1 %v91_v50  ;;  %89 = vadd.xlane.f32.xlu0 %v88_v51 }
  0x37   :  { %140 = vadd.xlane.f32.xlu1 %v139_v54  ;;  %137 = vadd.xlane.f32.xlu0 %v136_v55 }
  0x3b   :  { %98 = vadd.xlane.f32.xlu1 %v97_v58  ;;  %95 = vadd.xlane.f32.xlu0 %v94_v59 }
  0x3f   :  { %146 = vadd.xlane.f32.xlu1 %v145_v62  ;;  %143 = vadd.xlane.f32.xlu0 %v142_v63 }
  0x90   :  { %v102_v3 = vpop.xlane.xlu1 %101  ;;  %v54_v4 = vpop.xlane.xlu0 %53 }
  0x91   :  { %v148_v6 = vadd.f32 %v102_v3, %v54_v4 }
  0x93   :  { %v164_v7 = vmul.f32 0.0078125, %v148_v6 }
  0x94   :  { %v105_v10 = vpop.xlane.xlu1 %104  ;;  %v57_v11 = vpop.xlane.xlu0 %56 }
  0x95   :  { %v1246_v16 = vsub.f32 %v1029_v1, %v164_v7  ;;  %v1249_v17 = vsub.f32 %v1024_v0, %v164_v7  ;;  %v149_v18 = vadd.f32 %v105_v10, %v57_v11 }
  0x97   :  { %v165_v19 = vmul.f32 0.0078125, %v149_v18  ;;  %v212_v22 = vmul.f32 %v1246_v16, %v1246_v16  ;;  %v276_v1 = vmul.f32 %v1249_v17, %v1249_v17 }
  0x98   :  { %v63_v23 = vpop.xlane.xlu1 %62  ;;  %v60_v26 = vpop.xlane.xlu0 %59 }
  0x99   :  { %v1254_v27 = vsub.f32 %v1043_v5, %v165_v19  ;;  %v1257_v30 = vsub.f32 %v1034_v2, %v165_v19  ;;  %v228_v31 = vsel %vm51_vm0, %v212_v22, 0.0  ;;  %v292_v42 = vsel %vm51_vm0, %v276_v1, 0.0 }
  0x9a   :  { %229 = vadd.xlane.f32.xlu0 %v228_v31 }
  0x9b   :  { %v213_v0 = vmul.f32 %v1254_v27, %v1254_v27  ;;  %v277_v38 = vmul.f32 %v1257_v30, %v1257_v30 }
  0x9c   :  { %v111_v34 = vpop.xlane.xlu1 %110  ;;  %v108_v35 = vpop.xlane.xlu0 %107 }
  0x9d   :  { %v151_v39 = vadd.f32 %v111_v34, %v63_v23  ;;  %v150_v5 = vadd.f32 %v108_v35, %v60_v26  ;;  %v231_v2 = vsel %vm51_vm0, %v213_v0, 0.0  ;;  %v295_v51 = vsel %vm51_vm0, %v277_v38, 0.0 }
  0x9e   :  { %293 = vadd.xlane.f32.xlu0 %v292_v42  ;;  %232 = vadd.xlane.f32.xlu1 %v231_v2 }
  0x9f   :  { %v167_v43 = vmul.f32 0.0078125, %v151_v39  ;;  %v166_v46 = vmul.f32 0.0078125, %v150_v5 }
  0xa0   :  { %v69_v47 = vpop.xlane.xlu1 %68  ;;  %v66_v50 = vpop.xlane.xlu0 %65 }
  0xa1   :  { %v1270_v54 = vsub.f32 %v1052_v8, %v167_v43  ;;  %v1273_v55 = vsub.f32 %v1066_v12, %v167_v43  ;;  %v1276_v58 = vsub.f32 %v1057_v9, %v166_v46  ;;  %v1279_v59 = vsub.f32 %v1071_v13, %v166_v46 }
  0xa2   :  { %296 = vadd.xlane.f32.xlu1 %v295_v51 }
  0xa3   :  { %v215_v62 = vmul.f32 %v1270_v54, %v1270_v54  ;;  %v214_v63 = vmul.f32 %v1276_v58, %v1276_v58  ;;  %v279_v8 = vmul.f32 %v1273_v55, %v1273_v55  ;;  %v278_v12 = vmul.f32 %v1279_v59, %v1279_v59 }
  0xa4   :  { %v117_v3 = vpop.xlane.xlu1 %116  ;;  %v114_v4 = vpop.xlane.xlu0 %113 }
  0xa5   :  { %v153_v9 = vadd.f32 %v117_v3, %v69_v47  ;;  %v152_v6 = vadd.f32 %v114_v4, %v66_v50  ;;  %v237_v13 = vsel %vm51_vm0, %v215_v62, 0.0  ;;  %v234_v7 = vsel %vm51_vm0, %v214_v63, 0.0 }
  0xa6   :  { %238 = vadd.xlane.f32.xlu1 %v237_v13  ;;  %235 = vadd.xlane.f32.xlu0 %v234_v7  ;;  %v301_v22 = vsel %vm51_vm0, %v279_v8, 0.0  ;;  %v298_v23 = vsel %vm51_vm0, %v278_v12, 0.0 }
  0xa7   :  { %v169_v10 = vmul.f32 0.0078125, %v153_v9  ;;  %v168_v11 = vmul.f32 0.0078125, %v152_v6 }
  0xa8   :  { %v75_v18 = vpop.xlane.xlu1 %74  ;;  %v72_v19 = vpop.xlane.xlu0 %71 }
  0xa9   :  { %v1294_v26 = vsub.f32 %v1076_v14, %v169_v10  ;;  %v1297_v31 = vsub.f32 %v1094_v20, %v169_v10  ;;  %v1300_v1 = vsub.f32 %v1081_v15, %v168_v11  ;;  %v1303_v0 = vsub.f32 %v1099_v21, %v168_v11 }
  0xaa   :  { %302 = vadd.xlane.f32.xlu1 %v301_v22  ;;  %299 = vadd.xlane.f32.xlu0 %v298_v23 }
  0xab   :  { %v217_v34 = vmul.f32 %v1294_v26, %v1294_v26  ;;  %v216_v35 = vmul.f32 %v1300_v1, %v1300_v1  ;;  %v281_v20 = vmul.f32 %v1297_v31, %v1297_v31  ;;  %v280_v15 = vmul.f32 %v1303_v0, %v1303_v0 }
  0xac   :  { %v123_v38 = vpop.xlane.xlu1 %122  ;;  %v120_v14 = vpop.xlane.xlu0 %119 }
  0xad   :  { %v155_v39 = vadd.f32 %v123_v38, %v75_v18  ;;  %v154_v5 = vadd.f32 %v120_v14, %v72_v19  ;;  %v243_v21 = vsel %vm51_vm0, %v217_v34, 0.0  ;;  %v240_v42 = vsel %vm51_vm0, %v216_v35, 0.0 }
  0xae   :  { %244 = vadd.xlane.f32.xlu1 %v243_v21  ;;  %241 = vadd.xlane.f32.xlu0 %v240_v42  ;;  %v307_v50 = vsel %vm51_vm0, %v281_v20, 0.0  ;;  %v304_v51 = vsel %vm51_vm0, %v280_v15, 0.0 }
  0xaf   :  { %v171_v2 = vmul.f32 0.0078125, %v155_v39  ;;  %v170_v43 = vmul.f32 0.0078125, %v154_v5  ;;  %v930_v5 = vld [vmem:[%s1543_s1] sm:$0xff]  }
  0xb0   :  { %v81_v46 = vpop.xlane.xlu1 %80  ;;  %v78_v47 = vpop.xlane.xlu0 %77  ;;  %886 = vmatprep.subr.bf16.mxu0 %v930_v5 }
  0xb1   :  { %v1318_v62 = vsub.f32 %v1108_v24, %v171_v2  ;;  %v1321_v63 = vsub.f32 %v1122_v28, %v171_v2  ;;  %v1324_v3 = vsub.f32 %v1113_v25, %v170_v43  ;;  %v1327_v4 = vsub.f32 %v1127_v29, %v170_v43  ;;  %887 = vmatpush3.bf16.msra.mxu0 %v930_v5  ;;  %v936_v5 = vld [vmem:[%s1543_s1 + $0x18] sm:$0xff]  }
  0xb2   :  { %308 = vadd.xlane.f32.xlu1 %v307_v50  ;;  %305 = vadd.xlane.f32.xlu0 %v304_v51 }
  0xb3   :  { %v219_v8 = vmul.f32 %v1318_v62, %v1318_v62  ;;  %v218_v12 = vmul.f32 %v1324_v3, %v1324_v3  ;;  %v283_v28 = vmul.f32 %v1321_v63, %v1321_v63  ;;  %v282_v25 = vmul.f32 %v1327_v4, %v1327_v4 }
  0xb4   :  { %v129_v9 = vpop.xlane.xlu1 %128  ;;  %v126_v24 = vpop.xlane.xlu0 %125 }
  0xb5   :  { %v157_v6 = vadd.f32 %v129_v9, %v81_v46  ;;  %v156_v13 = vadd.f32 %v126_v24, %v78_v47  ;;  %v249_v29 = vsel %vm51_vm0, %v219_v8, 0.0  ;;  %v246_v7 = vsel %vm51_vm0, %v218_v12, 0.0  ;;  %v931_v9 = vld [vmem:[%s1544_s2 + $0x8] sm:$0xff]  }
  0xb6   :  { %250 = vadd.xlane.f32.xlu1 %v249_v29  ;;  %247 = vadd.xlane.f32.xlu0 %v246_v7  ;;  %v313_v22 = vsel %vm51_vm0, %v283_v28, 0.0  ;;  %v310_v23 = vsel %vm51_vm0, %v282_v25, 0.0  ;;  %v932_v24 = vld [vmem:[%s1543_s1 + $0x8] sm:$0xff]  }
  0xb7   :  { %v173_v10 = vmul.f32 0.0078125, %v157_v6  ;;  %v172_v11 = vmul.f32 0.0078125, %v156_v13  ;;  %888 = vmatprep.subr.bf16.mxu0 %v932_v24 }
  0xb8   :  { %v87_v18 = vpop.xlane.xlu1 %86  ;;  %v84_v19 = vpop.xlane.xlu0 %83  ;;  %889 = vmatpush3.bf16.msra.mxu0 %v932_v24 }
  0xb9   :  { %v1342_v34 = vsub.f32 %v1136_v32, %v173_v10  ;;  %v1345_v35 = vsub.f32 %v1150_v36, %v173_v10  ;;  %v1348_v38 = vsub.f32 %v1141_v33, %v172_v11  ;;  %v1351_v14 = vsub.f32 %v1155_v37, %v172_v11  ;;  %v929_v37 = vld [vmem:[%s1544_s2] sm:$0xff]   ;;  %v934_v11 = vld [vmem:[%s1543_s1 + $0x10] sm:$0xff]  }
  0xba   :  { %314 = vadd.xlane.f32.xlu1 %v313_v22  ;;  %311 = vadd.xlane.f32.xlu0 %v310_v23 }
  0xbb   :  { %v221_v20 = vmul.f32 %v1342_v34, %v1342_v34  ;;  %v220_v15 = vmul.f32 %v1348_v38, %v1348_v38  ;;  %v285_v36 = vmul.f32 %v1345_v35, %v1345_v35  ;;  %v284_v33 = vmul.f32 %v1351_v14, %v1351_v14  ;;  %862 = vmatprep.subr.bf16.mxu1 %v929_v37 }
  0xbc   :  { %v135_v39 = vpop.xlane.xlu1 %134  ;;  %v132_v32 = vpop.xlane.xlu0 %131  ;;  %863 = vmatpush3.bf16.msra.mxu1 %v929_v37  ;;  %890 = vmatprep.subr.bf16.mxu0 %v934_v11  ;;  %v935_v37 = vld [vmem:[%s1544_s2 + $0x18] sm:$0xff]  }
  0xbd   :  { %v159_v21 = vadd.f32 %v135_v39, %v87_v18  ;;  %v158_v42 = vadd.f32 %v132_v32, %v84_v19  ;;  %v255_v2 = vsel %vm51_vm0, %v221_v20, 0.0  ;;  %v252_v43 = vsel %vm51_vm0, %v220_v15, 0.0  ;;  %864 = vmatprep.subr.bf16.mxu1 %v931_v9  ;;  %891 = vmatpush3.bf16.msra.mxu0 %v934_v11 }
  0xbe   :  { %256 = vadd.xlane.f32.xlu1 %v255_v2  ;;  %253 = vadd.xlane.f32.xlu0 %v252_v43  ;;  %v319_v8 = vsel %vm51_vm0, %v285_v36, 0.0  ;;  %v316_v12 = vsel %vm51_vm0, %v284_v33, 0.0 }
  0xbf   :  { %v175_v46 = vmul.f32 0.0078125, %v159_v21  ;;  %v174_v47 = vmul.f32 0.0078125, %v158_v42  ;;  %892 = vmatprep.subr.bf16.mxu0 %v936_v5 }
  0xc0   :  { %v93_v50 = vpop.xlane.xlu1 %92  ;;  %v90_v51 = vpop.xlane.xlu0 %89  ;;  %865 = vmatpush3.bf16.msra.mxu1 %v931_v9 }
  0xc1   :  { %v1378_v28 = vsub.f32 %v1164_v40, %v175_v46  ;;  %v1381_v25 = vsub.f32 %v1178_v44, %v175_v46  ;;  %v1384_v6 = vsub.f32 %v1169_v41, %v174_v47  ;;  %v1387_v13 = vsub.f32 %v1183_v45, %v174_v47  ;;  %v933_v45 = vld [vmem:[%s1544_s2 + $0x10] sm:$0xff]   ;;  %893 = vmatpush3.bf16.msra.mxu0 %v936_v5 }
  0xc2   :  { %320 = vadd.xlane.f32.xlu1 %v319_v8  ;;  %317 = vadd.xlane.f32.xlu0 %v316_v12 }
  0xc3   :  { %v223_v29 = vmul.f32 %v1378_v28, %v1378_v28  ;;  %v222_v7 = vmul.f32 %v1384_v6, %v1384_v6  ;;  %v287_v44 = vmul.f32 %v1381_v25, %v1381_v25  ;;  %v286_v41 = vmul.f32 %v1387_v13, %v1387_v13  ;;  %866 = vmatprep.subr.bf16.mxu1 %v933_v45 }
  0xc4   :  { %v141_v40 = vpop.xlane.xlu1 %140  ;;  %v138_v10 = vpop.xlane.xlu0 %137  ;;  %867 = vmatpush3.bf16.msra.mxu1 %v933_v45 }
  0xc5   :  { %v161_v18 = vadd.f32 %v141_v40, %v93_v50  ;;  %v160_v19 = vadd.f32 %v138_v10, %v90_v51  ;;  %v261_v22 = vsel %vm51_vm0, %v223_v29, 0.0  ;;  %v258_v23 = vsel %vm51_vm0, %v222_v7, 0.0  ;;  %868 = vmatprep.subr.bf16.mxu1 %v935_v37 }
  0xc6   :  { %262 = vadd.xlane.f32.xlu1 %v261_v22  ;;  %259 = vadd.xlane.f32.xlu0 %v258_v23  ;;  %v325_v36 = vsel %vm51_vm0, %v287_v44, 0.0  ;;  %v322_v33 = vsel %vm51_vm0, %v286_v41, 0.0 }
  0xc7   :  { %v177_v20 = vmul.f32 0.0078125, %v161_v18  ;;  %v176_v15 = vmul.f32 0.0078125, %v160_v19 }
  0xc8   :  { %v99_v39 = vpop.xlane.xlu1 %98  ;;  %v96_v32 = vpop.xlane.xlu0 %95  ;;  %869 = vmatpush3.bf16.msra.mxu1 %v935_v37 }
  0xc9   :  { %v1414_v21 = vsub.f32 %v1192_v48, %v177_v20  ;;  %v1417_v42 = vsub.f32 %v1206_v52, %v177_v20  ;;  %v1420_v2 = vsub.f32 %v1197_v49, %v176_v15  ;;  %v1423_v43 = vsub.f32 %v1211_v53, %v176_v15 }
  0xca   :  { %326 = vadd.xlane.f32.xlu1 %v325_v36  ;;  %323 = vadd.xlane.f32.xlu0 %v322_v33 }
  0xcb   :  { %v225_v46 = vmul.f32 %v1414_v21, %v1414_v21  ;;  %v224_v47 = vmul.f32 %v1420_v2, %v1420_v2  ;;  %v289_v52 = vmul.f32 %v1417_v42, %v1417_v42  ;;  %v288_v49 = vmul.f32 %v1423_v43, %v1423_v43 }
  0xcc   :  { %v147_v48 = vpop.xlane.xlu1 %146  ;;  %v144_v50 = vpop.xlane.xlu0 %143 }
  0xcd   :  { %v163_v53 = vadd.f32 %v147_v48, %v99_v39  ;;  %v162_v51 = vadd.f32 %v144_v50, %v96_v32  ;;  %v267_v8 = vsel %vm51_vm0, %v225_v46, 0.0  ;;  %v264_v12 = vsel %vm51_vm0, %v224_v47, 0.0 }
  0xce   :  { %268 = vadd.xlane.f32.xlu1 %v267_v8  ;;  %265 = vadd.xlane.f32.xlu0 %v264_v12  ;;  %v331_v29 = vsel %vm51_vm0, %v289_v52, 0.0  ;;  %v328_v7 = vsel %vm51_vm0, %v288_v49, 0.0 }
  0xcf   :  { %v179_v9 = vmul.f32 0.0078125, %v163_v53  ;;  %v178_v24 = vmul.f32 0.0078125, %v162_v51 }
  0xd1   :  { %v1438_v40 = vsub.f32 %v1220_v56, %v179_v9  ;;  %v1441_v10 = vsub.f32 %v1234_v60, %v179_v9  ;;  %v1444_v44 = vsub.f32 %v1225_v57, %v178_v24  ;;  %v1447_v41 = vsub.f32 %v1239_v61, %v178_v24 }
  0xd2   :  { %332 = vadd.xlane.f32.xlu1 %v331_v29  ;;  %329 = vadd.xlane.f32.xlu0 %v328_v7 }
  0xd3   :  { %v227_v45 = vmul.f32 %v1438_v40, %v1438_v40  ;;  %v226_v11 = vmul.f32 %v1444_v44, %v1444_v44  ;;  %v291_v60 = vmul.f32 %v1441_v10, %v1441_v10  ;;  %v290_v57 = vmul.f32 %v1447_v41, %v1447_v41 }
  0xd5   :  { %v273_v56 = vsel %vm51_vm0, %v227_v45, 0.0  ;;  %v270_v18 = vsel %vm51_vm0, %v226_v11, 0.0  ;;  %v337_v61 = vsel %vm51_vm0, %v291_v60, 0.0  ;;  %v334_v19 = vsel %vm51_vm0, %v290_v57, 0.0 }
  0xd6   :  { %274 = vadd.xlane.f32.xlu1 %v273_v56  ;;  %271 = vadd.xlane.f32.xlu0 %v270_v18 }
  0xda   :  { %338 = vadd.xlane.f32.xlu1 %v337_v61  ;;  %335 = vadd.xlane.f32.xlu0 %v334_v19 }
 0x127   :  { %v230_v22 = vpop.xlane.xlu0 %229 }
 0x12b   :  { %v233_v23 = vpop.xlane.xlu1 %232  ;;  %v294_v20 = vpop.xlane.xlu0 %293 }
 0x12c   :  { %v340_v15 = vadd.f32 %v294_v20, %v230_v22 }
 0x12e   :  { %v356_v39 = vmul.f32 0.0078125, %v340_v15 }
 0x12f   :  { %v297_v32 = vpop.xlane.xlu1 %296 }
 0x130   :  { %v372_v36 = vadd.f32 1e-05, %v356_v39  ;;  %v341_v33 = vadd.f32 %v297_v32, %v233_v23 }
 0x132   :  { %v357_v37 = vmul.f32 0.0078125, %v341_v33  ;;  %937 = vrsqrt.f32 %v372_v36 }
 0x133   :  { %v239_v5 = vpop.xlane.xlu1 %238  ;;  %v236_v46 = vpop.xlane.xlu0 %235 }
 0x134   :  { %v373_v47 = vadd.f32 1e-05, %v357_v37 }
 0x136   :  { %939 = vrsqrt.f32 %v373_v47 }
 0x137   :  { %v303_v48 = vpop.xlane.xlu1 %302  ;;  %v300_v50 = vpop.xlane.xlu0 %299 }
 0x138   :  { %v343_v52 = vadd.f32 %v303_v48, %v239_v5  ;;  %v342_v49 = vadd.f32 %v300_v50, %v236_v46 }
 0x13a   :  { %v359_v53 = vmul.f32 0.0078125, %v343_v52  ;;  %v358_v51 = vmul.f32 0.0078125, %v342_v49 }
 0x13b   :  { %v245_v8 = vpop.xlane.xlu1 %244  ;;  %v242_v12 = vpop.xlane.xlu0 %241 }
 0x13c   :  { %v375_v9 = vadd.f32 1e-05, %v359_v53  ;;  %v374_v24 = vadd.f32 1e-05, %v358_v51  ;;  %v938_v29 = vpop.eup %937 }
 0x13d   :  { %v428_v60 = vmul.f32 %v938_v29, %v1249_v17  ;;  %v404_v61 = vmul.f32 %v938_v29, %v1246_v16 }
 0x13e   :  { %941 = vrsqrt.f32 %v375_v9 }
 0x13f   :  { %943 = vrsqrt.f32 %v374_v24  ;;  %v309_v7 = vpop.xlane.xlu1 %308  ;;  %v306_v45 = vpop.xlane.xlu0 %305 }
 0x140   :  { %v940_v11 = vpop.eup %939  ;;  %v345_v56 = vadd.f32 %v309_v7, %v245_v8  ;;  %v344_v18 = vadd.f32 %v306_v45, %v242_v12 }
 0x141   :  { %v429_v57 = vmul.f32 %v940_v11, %v1257_v30  ;;  %v405_v19 = vmul.f32 %v940_v11, %v1254_v27 }
 0x142   :  { %v361_v22 = vmul.f32 0.0078125, %v345_v56  ;;  %v360_v23 = vmul.f32 0.0078125, %v344_v18 }
 0x143   :  { %v251_v20 = vpop.xlane.xlu1 %250  ;;  %v248_v15 = vpop.xlane.xlu0 %247  ;;  %v444_v39 = vpack.c.bf16 %v429_v57, %v428_v60  ;;  %v420_v32 = vpack.c.bf16 %v405_v19, %v404_v61 }
 0x144   :  { %v377_v36 = vadd.f32 1e-05, %v361_v22  ;;  %v376_v33 = vadd.f32 1e-05, %v360_v23 }
 0x145   :  { %870 = vmatprep.mubr.msk.bf16.mxu1 %vm51_vm0, %v444_v39  ;;  %894 = vmatprep.mubr.msk.bf16.mxu0 %vm51_vm0, %v420_v32 }
 0x146   :  { %945 = vrsqrt.f32 %v377_v36 }
 0x147   :  { %947 = vrsqrt.f32 %v376_v33  ;;  %v315_v17 = vpop.xlane.xlu1 %314  ;;  %v312_v30 = vpop.xlane.xlu0 %311 }
 0x148   :  { %v942_v37 = vpop.eup %941  ;;  %v347_v16 = vadd.f32 %v315_v17, %v251_v20  ;;  %v346_v5 = vadd.f32 %v312_v30, %v248_v15 }
 0x149   :  { %v944_v27 = vpop.eup %943  ;;  %v431_v46 = vmul.f32 %v942_v37, %v1273_v55  ;;  %v407_v47 = vmul.f32 %v942_v37, %v1270_v54 }
 0x14a   :  { %v363_v48 = vmul.f32 0.0078125, %v347_v16  ;;  %v362_v50 = vmul.f32 0.0078125, %v346_v5  ;;  %v430_v52 = vmul.f32 %v944_v27, %v1279_v59  ;;  %v406_v49 = vmul.f32 %v944_v27, %v1276_v58 }
 0x14b   :  { %v257_v53 = vpop.xlane.xlu1 %256  ;;  %v254_v51 = vpop.xlane.xlu0 %253 }
 0x14c   :  { %v379_v8 = vadd.f32 1e-05, %v363_v48  ;;  %v378_v12 = vadd.f32 1e-05, %v362_v50  ;;  %v445_v9 = vpack.c.bf16 %v431_v46, %v430_v52  ;;  %v421_v24 = vpack.c.bf16 %v407_v47, %v406_v49 }
 0x14e   :  { %949 = vrsqrt.f32 %v379_v8  ;;  %871 = vmatmul.mubr.msk.bf16.vlgmr.msra.gmra.mrb[0].mxu1 %vm51_vm0, %v445_v9  ;;  %895 = vmatmul.mubr.msk.bf16.vlgmr.msra.gmra.mrb[0].mxu0 %vm51_vm0, %v421_v24 }
 0x14f   :  { %951 = vrsqrt.f32 %v378_v12  ;;  %v321_v55 = vpop.xlane.xlu1 %320  ;;  %v318_v54 = vpop.xlane.xlu0 %317 }
 0x150   :  { %v946_v29 = vpop.eup %945  ;;  %v349_v7 = vadd.f32 %v321_v55, %v257_v53  ;;  %v348_v45 = vadd.f32 %v318_v54, %v254_v51 }
 0x151   :  { %v948_v59 = vpop.eup %947  ;;  %v433_v58 = vmul.f32 %v946_v29, %v1297_v31  ;;  %v409_v11 = vmul.f32 %v946_v29, %v1294_v26 }
 0x152   :  { %v365_v56 = vmul.f32 0.0078125, %v349_v7  ;;  %v364_v18 = vmul.f32 0.0078125, %v348_v45  ;;  %v432_v60 = vmul.f32 %v948_v59, %v1303_v0  ;;  %v408_v57 = vmul.f32 %v948_v59, %v1300_v1 }
 0x153   :  { %v263_v61 = vpop.xlane.xlu1 %262  ;;  %v260_v19 = vpop.xlane.xlu0 %259 }
 0x154   :  { %v381_v22 = vadd.f32 1e-05, %v365_v56  ;;  %v380_v23 = vadd.f32 1e-05, %v364_v18  ;;  %v446_v20 = vpack.c.bf16 %v433_v58, %v432_v60  ;;  %v422_v15 = vpack.c.bf16 %v409_v11, %v408_v57 }
 0x156   :  { %953 = vrsqrt.f32 %v381_v22  ;;  %874 = vmatprep.mubr.msk.bf16.mxu1 %vm51_vm0, %v446_v20  ;;  %898 = vmatprep.mubr.msk.bf16.mxu0 %vm51_vm0, %v422_v15 }
 0x157   :  { %955 = vrsqrt.f32 %v380_v23  ;;  %v327_v31 = vpop.xlane.xlu1 %326  ;;  %v324_v26 = vpop.xlane.xlu0 %323 }
 0x158   :  { %v950_v39 = vpop.eup %949  ;;  %v351_v32 = vadd.f32 %v327_v31, %v263_v61  ;;  %v350_v36 = vadd.f32 %v324_v26, %v260_v19 }
 0x159   :  { %v952_v0 = vpop.eup %951  ;;  %v435_v1 = vmul.f32 %v950_v39, %v1321_v63  ;;  %v411_v33 = vmul.f32 %v950_v39, %v1318_v62 }
 0x15a   :  { %v367_v17 = vmul.f32 0.0078125, %v351_v32  ;;  %v366_v30 = vmul.f32 0.0078125, %v350_v36  ;;  %v434_v37 = vmul.f32 %v952_v0, %v1327_v4  ;;  %v410_v16 = vmul.f32 %v952_v0, %v1324_v3 }
 0x15b   :  { %v269_v5 = vpop.xlane.xlu1 %268  ;;  %v266_v27 = vpop.xlane.xlu0 %265 }
 0x15c   :  { %v383_v46 = vadd.f32 1e-05, %v367_v17  ;;  %v382_v47 = vadd.f32 1e-05, %v366_v30  ;;  %v447_v48 = vpack.c.bf16 %v435_v1, %v434_v37  ;;  %v423_v50 = vpack.c.bf16 %v411_v33, %v410_v16  ;;  %v1512_v37 = vld [vmem:[%s1545_s3] ss:$0 sm:$0xff] }
 0x15d   :  { %s993_s3 = smov [#allocation2]  }
 0x15e   :  { %957 = vrsqrt.f32 %v383_v46  ;;  %875 = vmatmul.mubr.msk.bf16.gmra.mrb[4].mxu1 %vm51_vm0, %v447_v48  ;;  %899 = vmatmul.mubr.msk.bf16.gmra.mrb[4].mxu0 %vm51_vm0, %v423_v50  ;;  %s802_s16 = sshll.u32 %s993_s3, 4  ;;  %s803_s16 = int_to_ptr.vmem [resolvable:$true] %s802_s16 }
 0x15f   :  { %959 = vrsqrt.f32 %v382_v47  ;;  %v333_v63 = vpop.xlane.xlu1 %332  ;;  %v330_v62 = vpop.xlane.xlu0 %329  ;;  %s969_s17 = scalar_lea.vmem %s803_s16, 2048  ;;  %p974_p1 = scmp.lt.s32.totalorder %s803_s16, %s803_s16 }
 0x160   :  { %v954_v52 = vpop.eup %953  ;;  %v353_v49 = vadd.f32 %v333_v63, %v269_v5  ;;  %v352_v53 = vadd.f32 %v330_v62, %v266_v27  ;;  %p970_p0 = scmp.ne.s32.totalorder %s803_s16, %s969_s17  ;;  %p975_p2 = scmp.lt.s32.totalorder %s969_s17, %s969_s17 }
 0x161   :  { %v956_v4 = vpop.eup %955  ;;  %v437_v3 = vmul.f32 %v954_v52, %v1345_v35  ;;  %v413_v51 = vmul.f32 %v954_v52, %v1342_v34 }
 0x162   :  { %v369_v8 = vmul.f32 0.0078125, %v353_v49  ;;  %v368_v12 = vmul.f32 0.0078125, %v352_v53  ;;  %v436_v9 = vmul.f32 %v956_v4, %v1351_v14  ;;  %v412_v24 = vmul.f32 %v956_v4, %v1348_v38  ;;  %p976_p3 = por %p975_p2, %p974_p1 }
 0x163   :  { %v275_v55 = vpop.xlane.xlu1 %274  ;;  %v272_v54 = vpop.xlane.xlu0 %271 }
 0x164   :  { %v385_v29 = vadd.f32 1e-05, %v369_v8  ;;  %v384_v7 = vadd.f32 1e-05, %v368_v12  ;;  %v448_v45 = vpack.c.bf16 %v437_v3, %v436_v9  ;;  %v424_v59 = vpack.c.bf16 %v413_v51, %v412_v24  ;;  %p977_p4 = pnand %p976_p3, %p970_p0 }
 0x166   :  { %961 = vrsqrt.f32 %v385_v29  ;;  %878 = vmatprep.mubr.msk.bf16.mxu1 %vm51_vm0, %v448_v45  ;;  %902 = vmatprep.mubr.msk.bf16.mxu0 %vm51_vm0, %v424_v59 }
 0x167   :  { %963 = vrsqrt.f32 %v384_v7  ;;  %v339_v35 = vpop.xlane.xlu1 %338  ;;  %v336_v34 = vpop.xlane.xlu0 %335 }
 0x168   :  { %v958_v58 = vpop.eup %957  ;;  %v355_v11 = vadd.f32 %v339_v35, %v275_v55  ;;  %v354_v56 = vadd.f32 %v336_v34, %v272_v54 }
 0x169   :  { %v960_v14 = vpop.eup %959  ;;  %v439_v38 = vmul.f32 %v958_v58, %v1381_v25  ;;  %v415_v18 = vmul.f32 %v958_v58, %v1378_v28 }
 0x16a   :  { %v371_v60 = vmul.f32 0.0078125, %v355_v11  ;;  %v370_v57 = vmul.f32 0.0078125, %v354_v56  ;;  %v438_v61 = vmul.f32 %v960_v14, %v1387_v13  ;;  %v414_v19 = vmul.f32 %v960_v14, %v1384_v6 }
 0x16c   :  { %v387_v22 = vadd.f32 1e-05, %v371_v60  ;;  %v386_v23 = vadd.f32 1e-05, %v370_v57  ;;  %v449_v20 = vpack.c.bf16 %v439_v38, %v438_v61  ;;  %v425_v15 = vpack.c.bf16 %v415_v18, %v414_v19 }
 0x16e   :  { %965 = vrsqrt.f32 %v387_v22  ;;  %879 = vmatmul.mubr.msk.bf16.gmra.mrb[8].mxu1 %vm51_vm0, %v449_v20  ;;  %903 = vmatmul.mubr.msk.bf16.gmra.mrb[8].mxu0 %vm51_vm0, %v425_v15 }
 0x16f   :  { %967 = vrsqrt.f32 %v386_v23 }
 0x170   :  { %v962_v31 = vpop.eup %961 }
 0x171   :  { %v964_v25 = vpop.eup %963  ;;  %v441_v28 = vmul.f32 %v962_v31, %v1417_v42  ;;  %v417_v26 = vmul.f32 %v962_v31, %v1414_v21 }
 0x172   :  { %v440_v13 = vmul.f32 %v964_v25, %v1423_v43  ;;  %v416_v6 = vmul.f32 %v964_v25, %v1420_v2 }
 0x174   :  { %v450_v39 = vpack.c.bf16 %v441_v28, %v440_v13  ;;  %v426_v32 = vpack.c.bf16 %v417_v26, %v416_v6 }
 0x176   :  { %882 = vmatprep.mubr.msk.bf16.mxu1 %vm51_vm0, %v450_v39  ;;  %906 = vmatprep.mubr.msk.bf16.mxu0 %vm51_vm0, %v426_v32 }
 0x178   :  { %v966_v36 = vpop.eup %965 }
 0x179   :  { %v968_v0 = vpop.eup %967  ;;  %v443_v1 = vmul.f32 %v966_v36, %v1441_v10  ;;  %v419_v33 = vmul.f32 %v966_v36, %v1438_v40 }
 0x17a   :  { %v442_v42 = vmul.f32 %v968_v0, %v1447_v41  ;;  %v418_v21 = vmul.f32 %v968_v0, %v1444_v44 }
 0x17c   :  { %v451_v17 = vpack.c.bf16 %v443_v1, %v442_v42  ;;  %v427_v43 = vpack.c.bf16 %v419_v33, %v418_v21 }
 0x17e   :  { %883 = vmatmul.mubr.msk.bf16.gmra.mrb[12].mxu1 %vm51_vm0, %v451_v17  ;;  %907 = vmatmul.mubr.msk.bf16.gmra.mrb[12].mxu0 %vm51_vm0, %v427_v43 }
 0x221   :  { %v872_v2 = vpop.f32.mrb[0].mxu1  ;;  %v896_v30 = vpop.f32.mrb[0].mxu0 }
 0x222   :  { %v704_v10 = vadd.f32 %v896_v30, %v872_v2  ;;  %v550_v16 = vpop.f32.mrb[1].mxu1  ;;  %v695_v40 = vpop.f32.mrb[1].mxu0 }
 0x223   :  { %v696_v5 = vadd.f32 %v695_v40, %v550_v16  ;;  %v873_v41 = vpop.f32.mrb[2].mxu1  ;;  %v897_v27 = vpop.f32.mrb[2].mxu0 }
 0x224   :  { %v767_v44 = vadd.f32 %v1512_v37, %v704_v10  ;;  %v707_v46 = vadd.f32 %v897_v27, %v873_v41  ;;  %v553_v47 = vpop.f32.mrb[3].mxu1  ;;  %v698_v48 = vpop.f32.mrb[3].mxu0 }
 0x225   :  { %v765_v50 = vadd.f32 %v1512_v37, %v696_v5  ;;  %v699_v63 = vadd.f32 %v698_v48, %v553_v47 }
 0x226   :  { %783 = vst [vmem:[#allocation2 + $0x10] sm:$0xff] %v767_v44  ;;  %v768_v62 = vadd.f32 %v1512_v37, %v707_v46 }
 0x227   :  { %781 = vst [vmem:[#allocation2] sm:$0xff] %v765_v50  ;;  %v766_v52 = vadd.f32 %v1512_v37, %v699_v63 }
 0x228   :  { %784 = vst [vmem:[#allocation2 + $0x18] sm:$0xff] %v768_v62 }
 0x229   :  { %782 = vst [vmem:[#allocation2 + $0x8] sm:$0xff] %v766_v52 }
 0x231   :  { %v876_v49 = vpop.f32.mrb[4].mxu1  ;;  %v900_v53 = vpop.f32.mrb[4].mxu0 }
 0x232   :  { %v720_v4 = vadd.f32 %v900_v53, %v876_v49  ;;  %v566_v3 = vpop.f32.mrb[5].mxu1  ;;  %v711_v51 = vpop.f32.mrb[5].mxu0 }
 0x233   :  { %v712_v8 = vadd.f32 %v711_v51, %v566_v3  ;;  %v877_v12 = vpop.f32.mrb[6].mxu1  ;;  %v901_v9 = vpop.f32.mrb[6].mxu0 }
 0x234   :  { %v771_v24 = vadd.f32 %v1512_v37, %v720_v4  ;;  %v723_v55 = vadd.f32 %v901_v9, %v877_v12  ;;  %v569_v54 = vpop.f32.mrb[7].mxu1  ;;  %v714_v29 = vpop.f32.mrb[7].mxu0 }
 0x235   :  { %v769_v7 = vadd.f32 %v1512_v37, %v712_v8  ;;  %v715_v45 = vadd.f32 %v714_v29, %v569_v54 }
 0x236   :  { %787 = vst [vmem:[#allocation2 + $0x30] sm:$0xff] %v771_v24  ;;  %v772_v59 = vadd.f32 %v1512_v37, %v723_v55 }
 0x237   :  { %785 = vst [vmem:[#allocation2 + $0x20] sm:$0xff] %v769_v7  ;;  %v770_v35 = vadd.f32 %v1512_v37, %v715_v45 }
 0x238   :  { %788 = vst [vmem:[#allocation2 + $0x38] sm:$0xff] %v772_v59 }
 0x239   :  { %786 = vst [vmem:[#allocation2 + $0x28] sm:$0xff] %v770_v35 }
 0x241   :  { %v880_v34 = vpop.f32.mrb[8].mxu1  ;;  %v904_v58 = vpop.f32.mrb[8].mxu0 }
 0x242   :  { %v736_v11 = vadd.f32 %v904_v58, %v880_v34  ;;  %v582_v56 = vpop.f32.mrb[9].mxu1  ;;  %v727_v14 = vpop.f32.mrb[9].mxu0 }
 0x243   :  { %v728_v38 = vadd.f32 %v727_v14, %v582_v56  ;;  %v881_v18 = vpop.f32.mrb[10].mxu1  ;;  %v905_v60 = vpop.f32.mrb[10].mxu0 }
 0x244   :  { %v775_v57 = vadd.f32 %v1512_v37, %v736_v11  ;;  %v739_v61 = vadd.f32 %v905_v60, %v881_v18  ;;  %v585_v19 = vpop.f32.mrb[11].mxu1  ;;  %v730_v22 = vpop.f32.mrb[11].mxu0 }
 0x245   :  { %v773_v23 = vadd.f32 %v1512_v37, %v728_v38  ;;  %v731_v20 = vadd.f32 %v730_v22, %v585_v19 }
 0x246   :  { %791 = vst [vmem:[#allocation2 + $0x50] sm:$0xff] %v775_v57  ;;  %v776_v15 = vadd.f32 %v1512_v37, %v739_v61 }
 0x247   :  { %789 = vst [vmem:[#allocation2 + $0x40] sm:$0xff] %v773_v23  ;;  %v774_v31 = vadd.f32 %v1512_v37, %v731_v20 }
 0x248   :  { %792 = vst [vmem:[#allocation2 + $0x58] sm:$0xff] %v776_v15 }
 0x249   :  { %790 = vst [vmem:[#allocation2 + $0x48] sm:$0xff] %v774_v31 }
 0x251   :  { %v884_v25 = vpop.f32.mrb[12].mxu1  ;;  %v908_v28 = vpop.f32.mrb[12].mxu0 }
 0x252   :  { %v752_v26 = vadd.f32 %v908_v28, %v884_v25  ;;  %v598_v13 = vpop.f32.mrb[13].mxu1  ;;  %v743_v6 = vpop.f32.mrb[13].mxu0 }
 0x253   :  { %v744_v39 = vadd.f32 %v743_v6, %v598_v13  ;;  %v885_v32 = vpop.f32.mrb[14].mxu1  ;;  %v909_v36 = vpop.f32.mrb[14].mxu0 }
 0x254   :  { %v779_v0 = vadd.f32 %v1512_v37, %v752_v26  ;;  %v755_v1 = vadd.f32 %v909_v36, %v885_v32  ;;  %v601_v33 = vpop.f32.mrb[15].mxu1  ;;  %v746_v42 = vpop.f32.mrb[15].mxu0 }
 0x255   :  { %v777_v21 = vadd.f32 %v1512_v37, %v744_v39  ;;  %v747_v17 = vadd.f32 %v746_v42, %v601_v33 }
 0x256   :  { %795 = vst [vmem:[#allocation2 + $0x70] sm:$0xff] %v779_v0  ;;  %v780_v43 = vadd.f32 %v1512_v37, %v755_v1 }
 0x257   :  { %793 = vst [vmem:[#allocation2 + $0x60] sm:$0xff] %v777_v21  ;;  %v778_v2 = vadd.f32 %v1512_v37, %v747_v17 }
 0x258   :  { %796 = vst [vmem:[#allocation2 + $0x78] sm:$0xff] %v780_v43 }
 0x259   :  { %794 = vst [vmem:[#allocation2 + $0x68] sm:$0xff] %v778_v2 }
 0x25a   :  { %980 = shalt.err (!%p977_p4)
}
 0x25b   :  { %s981_s20 = scalar_lea.hbm %s1546_s4, 2048 }
 0x25c   :  { %p982_p5 = scmp.ne.s32.totalorder %s1546_s4, %s981_s20  ;;  %p985_p6 = scmp.lt.u32.totalorder %s981_s20, %s1546_s4 }
 0x25e   :  { %p987_p7 = pnand %p985_p6, %p982_p5 }
 0x260   :  { %990 = shalt.err (!%p987_p7)
}
 0x261   :  { %s994_s25 = smov 128   ;;  %s995_s26 = smov 8  }
 0x262   :  { %808 = dma.vmem_to_hbm [thread:$0]  %s803_s16, 2048, %s1546_s4, [#allocation3], %s994_s25, %s994_s25, %s995_s26  }
 0x263   :  { %991 = dma.done.wait [#allocation3], 2048  }
 0x264   :  { %992 = vsyncadd [#allocation3], 4294965248 }
 0x265   :  { %812 = vsyncpa [#allocation3], 1 }

</bundles_post_ra>
